<compile_context>
chip_gen: v6e
topology: v6e:2x2x1
jax: 0.10.0
libtpu: 0.0.40
codegen_flags: <defaults>
</compile_context>

<pallas_src>
import jax
import jax.numpy as jnp
from jax.experimental import pallas as pl
from jax.experimental.pallas import tpu as pltpu


def _prenorm_kernel(x_ref, shift_ref, scale_ref, o_ref):
    # x_ref:     (block_rows, feat)  input dtype
    # shift_ref: (1, feat) f32, resident across the whole grid
    # scale_ref: (1, feat) f32, resident across the whole grid
    x = x_ref[...].astype(jnp.float32)
    o_ref[...] = ((x + shift_ref[...]) * scale_ref[...]).astype(o_ref.dtype)


def _round_down(x, m):
    return (x // m) * m


def prenorm_forward(x, shift=None, scale=None, *, n_units=None,
                    target_block_bytes=4 * 1024 * 1024,
                    vmem_limit_bytes=32 * 1024 * 1024,
                    min_grid_steps=8,
                    donate_input=False):
    """Apply (x + shift) * scale, shift/scale of shape (n_units,) (or (1,))."""
    assert shift is not None or scale is not None
    if n_units is None:
        n_units = (shift if shift is not None else scale).shape[-1]
    feat = x.shape[-1]
    assert n_units == 1 or feat == n_units, (
        f"Expected input dimension of size {n_units}, got {feat}.")

    orig_shape = x.shape
    rows = 1
    for d in orig_shape[:-1]:
        rows *= d

    # Per-feature params in f32 (matches the module's f32 buffers).  n_units==1
    # broadcasts across the feature axis, as in the PyTorch module.
    shift_f = (jnp.zeros((n_units,), jnp.float32) if shift is None
               else jnp.asarray(shift, jnp.float32))
    scale_f = (jnp.ones((n_units,), jnp.float32) if scale is None
               else jnp.asarray(scale, jnp.float32))
    shift2 = jnp.broadcast_to(shift_f, (feat,)).reshape(1, feat)
    scale2 = jnp.broadcast_to(scale_f, (feat,)).reshape(1, feat)

    if rows == 0 or feat == 0:
        # Degenerate empty input: nothing to launch.
        return ((x.astype(jnp.float32) + shift2[0]) * scale2[0]).astype(x.dtype)

    # Collapse leading dims only -- this reshape preserves the tiled layout
    # (pure bitcast), unlike folding rows into the lane axis.
    x2 = x.reshape(rows, feat)

    # --- block sizing -------------------------------------------------------
    itemsize = jnp.dtype(x.dtype).itemsize
    sub = max(8, 32 // itemsize)          # native sublane multiple: f32 8 / bf16 16 / int8 32
    bytes_per_row = max(feat * itemsize, 1)

    block_rows = max(sub, _round_down(target_block_bytes // bytes_per_row, sub))
    # Cap block size so the grid has enough steps to occupy both v7x
    # TensorCores and keep the pipeline busy.
    cap = max(sub, _round_down(max(rows // min_grid_steps, 1), sub))
    block_rows = min(block_rows, cap)
    if block_rows >= rows:
        block_rows = rows                 # full-extent block satisfies the (8,128) rule
    grid = (pl.cdiv(rows, block_rows),)   # ragged tail handled by the pipeline (no pad)

    extra_kwargs = {}
    if donate_input:
        # Legal only if the caller no longer needs x; halves HBM footprint.
        extra_kwargs["input_output_aliases"] = {0: 0}

    out = pl.pallas_call(
        _prenorm_kernel,
        out_shape=jax.ShapeDtypeStruct((rows, feat), x.dtype),
        grid_spec=pltpu.PrefetchScalarGridSpec(
            num_scalar_prefetch=0,
            grid=grid,
            in_specs=[
                # NOTE: if a profile ever shows exposed DMA at block
                # boundaries, add pipeline_mode=pl.Buffered(3) here/on out.
                pl.BlockSpec((block_rows, feat), lambda i: (i, 0)),
                pl.BlockSpec((1, feat), lambda i: (0, 0)),
                pl.BlockSpec((1, feat), lambda i: (0, 0)),
            ],
            out_specs=pl.BlockSpec((block_rows, feat), lambda i: (i, 0)),
        ),
        compiler_params=pltpu.CompilerParams(
            dimension_semantics=("parallel",),
            vmem_limit_bytes=vmem_limit_bytes),
        **extra_kwargs,
    )(x2, shift2, scale2)

    return out.reshape(orig_shape)


if __name__ == "__main__":
    key = jax.random.PRNGKey(0)
    k_x, k_shift, k_scale = jax.random.split(key, 3)

    # Module: PreNormLayer(n_units=32); input e.g. (batch=2, seq=8, hidden=32)
    n_units = 32
    x = jax.random.normal(k_x, (2, 8, n_units), dtype=jnp.float32)

    # Buffers init as zeros/ones in the PyTorch module; use nontrivial values
    # here to exercise the math.
    shift = 0.1 * jax.random.normal(k_shift, (n_units,), dtype=jnp.float32)
    scale = 1.0 + 0.05 * jax.random.normal(k_scale, (n_units,), dtype=jnp.float32)

    # f32 path.
    out = jax.block_until_ready(prenorm_forward(x, shift, scale))
    ref = (x + shift) * scale
    assert out.shape == x.shape and out.dtype == x.dtype
    assert jnp.allclose(out, ref, atol=1e-5, rtol=1e-5)

    # Ragged row count (rows = 21): partial last grid block, no padding copy.
    x_r = jax.random.normal(k_x, (3, 7, n_units), dtype=jnp.float32)
    out_r = jax.block_until_ready(prenorm_forward(x_r, shift, scale))
    assert jnp.allclose(out_r, (x_r + shift) * scale, atol=1e-5, rtol=1e-5)

    # bf16 input: math in f32 (module keeps f32 buffers), result cast to bf16.
    x_b = x.astype(jnp.bfloat16)
    out_b = jax.block_until_ready(prenorm_forward(x_b, shift, scale))
    ref_b = ((x_b.astype(jnp.float32) + shift) * scale).astype(jnp.bfloat16)
    assert out_b.dtype == jnp.bfloat16
    assert jnp.allclose(out_b.astype(jnp.float32), ref_b.astype(jnp.float32),
                        atol=1e-2, rtol=1e-2)

    # shift-only / scale-only variants (module allows either buffer to be None).
    out_s = jax.block_until_ready(prenorm_forward(x, shift=shift, scale=None))
    assert jnp.allclose(out_s, x + shift, atol=1e-5, rtol=1e-5)
    out_c = jax.block_until_ready(prenorm_forward(x, shift=None, scale=scale))
    assert jnp.allclose(out_c, x * scale, atol=1e-5, rtol=1e-5)

    # TODO(synk): start_updates/update_stats/stop_updates (+ PreNormException)
    # are host-side pre-training statistics bookkeeping, not part of the
    # inference forward pass; not implemented as a kernel.

    print("KERNEL_OK")
</pallas_src>

<mosaic_0001>
module attributes {stable_mosaic.version = 11 : i64} {
  func.func @_prenorm_kernel(%arg0: i32, %arg1: memref<8x32xf32, #tpu.memory_space<vmem>>, %arg2: memref<1x32xf32, #tpu.memory_space<vmem>>, %arg3: memref<1x32xf32, #tpu.memory_space<vmem>>, %arg4: memref<8x32xf32, #tpu.memory_space<vmem>>) attributes {dimension_semantics = [#tpu.dimension_semantics<parallel>], iteration_bounds = array<i64: 2>, scalar_prefetch = 0 : i64, scratch_operands = 0 : i64, tpu.core_type = #tpu.core_type<tc>, window_params = [{transform_indices = @transform_0, window_bounds = array<i64: 8, 32>}, {pipeline_mode = #tpu.pipeline_mode<synchronous>, transform_indices = @transform_1, window_bounds = array<i64: 1, 32>}, {pipeline_mode = #tpu.pipeline_mode<synchronous>, transform_indices = @transform_2, window_bounds = array<i64: 1, 32>}, {transform_indices = @transform_3, window_bounds = array<i64: 8, 32>}]} {
    %c0 = arith.constant 0 : index
    %c0_0 = arith.constant 0 : index
    %0 = vector.load %arg1[%c0, %c0_0] : memref<8x32xf32, #tpu.memory_space<vmem>>, vector<8x32xf32>
    %c0_1 = arith.constant 0 : index
    %c0_2 = arith.constant 0 : index
    %1 = vector.load %arg2[%c0_1, %c0_2] : memref<1x32xf32, #tpu.memory_space<vmem>>, vector<1x32xf32>
    %2 = vector.broadcast %1 : vector<1x32xf32> to vector<8x32xf32>
    %3 = arith.addf %0, %2 : vector<8x32xf32>
    %c0_3 = arith.constant 0 : index
    %c0_4 = arith.constant 0 : index
    %4 = vector.load %arg3[%c0_3, %c0_4] : memref<1x32xf32, #tpu.memory_space<vmem>>, vector<1x32xf32>
    %5 = vector.broadcast %4 : vector<1x32xf32> to vector<8x32xf32>
    %6 = arith.mulf %3, %5 : vector<8x32xf32>
    %c0_5 = arith.constant 0 : index
    %c0_6 = arith.constant 0 : index
    %7 = vector.load %arg4[%c0_5, %c0_6] : memref<8x32xf32, #tpu.memory_space<vmem>>, vector<8x32xf32>
    tpu.vector_store %arg4[%c0_5, %c0_6], %6 {strides = array<i32>} : memref<8x32xf32, #tpu.memory_space<vmem>>, vector<8x32xf32>,
    return
  }
  func.func @transform_0(%arg0: i32) -> (i32, i32) {
    %c0_i32 = arith.constant 0 : i32
    %c0_i32_0 = arith.constant 0 : i32
    return %arg0, %c0_i32 : i32, i32
  }
  func.func @transform_1(%arg0: i32) -> (i32, i32) {
    %c0_i32 = arith.constant 0 : i32
    %c0_i32_0 = arith.constant 0 : i32
    %c0_i32_1 = arith.constant 0 : i32
    return %c0_i32, %c0_i32_0 : i32, i32
  }
  func.func @transform_2(%arg0: i32) -> (i32, i32) {
    %c0_i32 = arith.constant 0 : i32
    %c0_i32_0 = arith.constant 0 : i32
    %c0_i32_1 = arith.constant 0 : i32
    return %c0_i32, %c0_i32_0 : i32, i32
  }
  func.func @transform_3(%arg0: i32) -> (i32, i32) {
    %c0_i32 = arith.constant 0 : i32
    %c0_i32_0 = arith.constant 0 : i32
    return %arg0, %c0_i32 : i32, i32
  }
}

</mosaic_0001>

<bundles_post_ra>
// kernel: tpu_custom_call.1
= control target key start
LH: loop header
LB: loop body
LE: loop exit
PB: predicated region body
PF: predicated region fallthrough
CT: control target
= control target key end

     0   :  { %8 = vsyncpa [#allocation3], 0  ;;  %s612_s0 = inlined_call_operand.hbm [shape: f32[16,32], index: 0, kind: input, shape index: {}]   ;;  %s613_s1 = inlined_call_operand.vmem [shape: f32[1,32], index: 1, kind: input, shape index: {}]   ;;  %s614_s2 = inlined_call_operand.vmem [shape: f32[1,32], index: 2, kind: input, shape index: {}]   ;;  %s615_s3 = inlined_call_operand.hbm [shape: f32[16,32], index: 3, kind: output, shape index: {}]  }
   0x1   :  { %10 = vsyncpa [#allocation3 + $0x1], 0 }
   0x2   :  { %11 = vsyncpa [#allocation4], 0 }
   0x3   :  { %13 = vsyncpa [#allocation4 + $0x1], 0  ;;  %s465_s12 = smov 0   ;;  %s467_s13 = smov 0  }
   0x4   :  { %s469_s14 = smov 0   ;;  %s471_s15 = smov 0  }
   0x5 LB: > { %s486_s16 = sadd.s32 4294967295, %s441_s15   ;;  %s289_s17 = sadd.s32 4294967294, %s441_s15   ;;  %s441_s15 = sphi %s471_s15, %s632_s15   ;;  %s437_s14 = sphi %s469_s14, %s631_s14   ;;  %s433_s13 = sphi %s467_s13, %s630_s13   ;;  %s429_s12 = sphi %s465_s12, %s629_s12  }
   0x6   : > { %s490_s18 = sadd.s32 1, %s441_s15   ;;  %s26_s19 = sadd.s32 1, %s437_s14 }
   0x7   : > { %s23_s20 = ssub.s32 %s441_s15, %s490_s18  ;;  %p33_p0 = scmp.ne.s32.totalorder %s437_s14, %s433_s13 }
   0x8   : > { %p24_p1 = scmp.eq.s32.totalorder %s23_s20, 0  ;;  %p34_p2 = scmp.eq.s32.totalorder %s441_s15, 0 }
   0x9   : > { %p39_p3 = scmp.ne.s32.totalorder %s433_s13, %s429_s12  ;;  %p40_p4 = scmp.eq.s32.totalorder %s486_s16, 0 }
   0xa   : > { %s502_s21 = scalar_select %p24_p1, %s437_s14, %s26_s19  }
   0xb   : > { %p504_p5 = por %p34_p2, %p33_p0  ;;  %p508_p6 = por %p40_p4, %p39_p3 }
   0xc   : > { %p105_p7 = scmp.eq.s32.totalorder %s486_s16, 1  ;;  %p111_p8 = scmp.eq.s32.totalorder %s289_s17, 1 }
   0xd   : > { %s619_s23 = scalar_select %p508_p6, 1, 0 }
   0xe   : > { %p315_p10 = scmp.lt.s32.totalorder %s441_s15, 2  ;;  %p515_p11 = por %p105_p7, %p33_p0 }
   0xf   : > { %p519_p12 = por %p111_p8, %p39_p3  ;;  %s137_s26 = sand.u32 1, %s437_s14  }
  0x10   : > { %s620_s24 = scalar_select %p515_p11, 1, 0 }
  0x11   : > { %s621_s25 = scalar_select %p519_p12, 1, 0 }
  0x12   : > { %s293_s27 = sshll.u32 %s441_s15, 7  ;;  %s292_s28 = sshll.u32 %s137_s26, 3 }
  0x13   : > { %s528_s4 = scalar_lea.hbm %s612_s0, %s293_s27  ;;  %s141_s5 = scalar_lea.vmem [#allocation2], %s292_s28 }
  0x14   : > { %s148_s6 = sshll.u32 %s141_s5, 4  ;;  %p532_p13 = pnand %p315_p10, %p504_p5  ;;  %s536_s6 = int_to_ptr.vmem [resolvable:$true] %s148_s6 }
  0x15   : > { %s138_s8 = scalar_lea.sflag [#allocation3], %s137_s26  ;;  %s349_s9 = scalar_lea.hbm %s528_s4, 128 }
  0x16   : > { %p350_p2 = scmp.ne.s32.totalorder %s528_s4, %s349_s9  ;;  %p351_p3 = pneg %p532_p13 }
  0x17   : > { %s354_s17 = scalar_lea.hbm %s612_s0, 256  ;;  %p355_p5 = scmp.lt.s32.totalorder %s528_s4, %s612_s0 }
  0x18   : > { %p352_p4 = pnand %p351_p3, %p350_p2  ;;  %p356_p8 = scmp.lt.s32.totalorder %s354_s17, %s349_s9 }
  0x1a   : > { %p353_p7 = pneg %p352_p4  ;;  %p357_p10 = por %p356_p8, %p355_p5 }
  0x1c   : > { %p358_p9 = pnand %p357_p10, %p353_p7 }
  0x1e   : > { %361 = shalt.err (!%p358_p9)
}
  0x1f   : > { %s362_s22 = scalar_lea.vmem %s536_s6, 128  ;;  %s443_s26 = smov [#allocation2]  }
  0x20   : > { %p363_p0 = scmp.ne.s32.totalorder %s536_s6, %s362_s22  ;;  %s367_s27 = sshll.u32 %s443_s26, 4  ;;  %s368_s27 = int_to_ptr.vmem [resolvable:$false] %s367_s27 }
  0x21   : > { %s369_s28 = scalar_lea.vmem %s368_s27, 256  ;;  %p370_p4 = scmp.lt.s32.totalorder %s536_s6, %s368_s27 }
  0x22   : > { %p365_p1 = pnand %p363_p0, %p351_p3  ;;  %p371_p12 = scmp.lt.s32.totalorder %s369_s28, %s362_s22 }
  0x24   : > { %p366_p2 = pneg %p365_p1  ;;  %p372_p11 = por %p371_p12, %p370_p4 }
  0x26   : > { %p373_p6 = pnand %p372_p11, %p366_p2 }
  0x28   : > { %376 = shalt.err (!%p373_p6)
}
  0x29   : > { %310 = dma.hbm_to_vmem [thread:$0]  (!%p532_p13), %s528_s4, 128, %s536_s6, %s138_s8  }
  0x2a   : > { %p623_p9 = scmp.lt.s32.totalorder %s441_s15, 3  ;;  %p624_p7 = scmp.ge.s32.totalorder %s441_s15, 1 }
  0x2c   : > { %p154_p0 = pnand %p624_p7, %p623_p9 }
  0x2d   : > { %s563_s29 = sand.u32 (!%p154_p0), 1, %s433_s13   ;;  %p625_p6 = scmp.ne.s32.totalorder (!%p154_p0), %s619_s23, 0 }
  0x2e   : > { %157 = sbr.rel (%p154_p0) target bundleno = 77 (0x4d), region = 32  ;;  %s295_s30 = sshll.u32 (!%p154_p0), %s563_s29, 3 }
  0x2f   : > { %s160_s5 = scalar_lea.sflag (!%p154_p0), [#allocation3], %s563_s29  ;;  %s163_s9 = scalar_lea.vmem (!%p154_p0), [#allocation2], %s295_s30 }
  0x33   : > { %420 = dma.done.wait (%p625_p6), %s160_s5, 128  }
  0x34   : > { %422 = vsyncadd (%p625_p6), %s160_s5, 4294967168  ;;  %s185_s4 = scalar_lea.vmem [#allocation5], %s295_s30  ;;  %v186_v0 = vld [vmem:[%s163_s9] sm:$0xff]  ;;  %s300_s17 = sshll.u32 %s486_s16, 7  ;;  %vm203_vm0 = vcmask 261120  }
  0x35   : > { %s219_s6 = sshll.u32 %s185_s4, 4  ;;  %v297_v1 = vld [vmem:[%s613_s1] ss:$0 sm:$0xff]  ;;  %s217_s20 = scalar_lea.hbm %s615_s3, %s300_s17  ;;  %s220_s6 = int_to_ptr.vmem [resolvable:$true] %s219_s6 }
  0x36   : > { %v298_v2 = vld [vmem:[%s614_s2] ss:$0 sm:$0xff]  ;;  %v194_v3 = vadd.f32 %v297_v1, %v186_v0  ;;  %s206_s22 = scalar_lea.sflag [#allocation4], %s563_s29  ;;  %s377_s26 = scalar_lea.vmem %s220_s6, 128 }
  0x37   : > { %p378_p11 = scmp.ne.s32.totalorder %s220_s6, %s377_s26  ;;  %p626_p12 = scmp.ne.s32.totalorder %s620_s24, 0 }
  0x38   : > { %v202_v4 = vmul.f32 %v298_v2, %v194_v3  ;;  %s444_s27 = smov [#allocation5]  }
  0x39   : > { %p379_p13 = pnand %p378_p11, %p626_p12  ;;  %s381_s28 = sshll.u32 %s444_s27, 4  ;;  %s382_s28 = int_to_ptr.vmem [resolvable:$false] %s381_s28 }
  0x3a   : > { %204 = vst.msk [vmem:[%s185_s4] sm:$0xff] %vm203_vm0, %v202_v4  ;;  %s383_s30 = scalar_lea.vmem %s382_s28, 256  ;;  %p384_p3 = scmp.lt.s32.totalorder %s220_s6, %s382_s28 }
  0x3b   : > { %p380_p1 = pneg %p379_p13  ;;  %p385_p5 = scmp.lt.s32.totalorder %s383_s30, %s377_s26 }
  0x3d   : > { %p386_p8 = por %p385_p5, %p384_p3 }
  0x3f   : > { %p387_p10 = pnand %p386_p8, %p380_p1 }
  0x41   : > { %390 = shalt.err (!%p387_p10)
}
  0x42   : > { %s391_s16 = scalar_lea.hbm %s217_s20, 128  ;;  %s395_s9 = scalar_lea.hbm %s615_s3, 256 }
  0x43   : > { %p392_p2 = scmp.ne.s32.totalorder %s217_s20, %s391_s16  ;;  %p396_p7 = scmp.lt.s32.totalorder %s217_s20, %s615_s3 }
  0x44   : > { %p397_p0 = scmp.lt.s32.totalorder %s395_s9, %s391_s16 }
  0x45   : > { %p393_p4 = pnand %p392_p2, %p626_p12 }
  0x46   : > { %p398_p6 = por %p397_p0, %p396_p7 }
  0x47   : > { %p394_p9 = pneg %p393_p4 }
  0x49   : > { %p399_p11 = pnand %p398_p6, %p394_p9 }
  0x4b   : > { %402 = shalt.err (!%p399_p11)
}
  0x4c   : > { %305 = dma.vmem_to_hbm [thread:$0]  (%p626_p12), %s220_s6, 128, %s217_s20, %s206_s22  }
  0x4d PF: > { %s231_s8 = sand.u32 1, %s429_s12   ;;  %p627_p13 = scmp.ne.s32.totalorder %s621_s25, 0 }
  0x4e   : > { %p628_p1 = scmp.ge.s32.totalorder %s441_s15, 2  ;;  %s232_s10 = scalar_lea.sflag [#allocation4], %s231_s8 }
  0x50   : > { %p312_p3 = pnand %p628_p1, %p627_p13 }
  0x52   : > { %p313_p5 = pneg %p312_p3 }
  0x54   : > { %424 = dma.done.wait (%p313_p5), %s232_s10, 128  }
  0x55   : > { %426 = vsyncadd (%p313_p5), %s232_s10, 4294967168  ;;  %p16_p8 = scmp.ge.s32.totalorder %s490_s18, 4   ;;  %s629_s12 = smov %s433_s13 }
  0x56   : > { %s630_s13 = smov %s437_s14  ;;  %s631_s14 = smov %s502_s21 }
  0x57   : > { %s632_s15 = smov %s490_s18  ;;  %18 = sbr.rel (!%p16_p8) target bundleno = 5 (0x5), region = 77 }
  0x5c   :  { %237 = vsyncpa [#allocation3], 1 }
  0x5d   :  { %239 = vsyncpa [#allocation3 + $0x1], 1 }
  0x5e   :  { %240 = vsyncpa [#allocation4], 1 }
  0x5f   :  { %242 = vsyncpa [#allocation4 + $0x1], 1 }

</bundles_post_ra>
